<compile_context>
chip_gen: v6e
topology: v6e:2x2x1
jax: 0.10.0
libtpu: 0.0.40
codegen_flags: <defaults>
</compile_context>

<pallas_src>
import math

import jax
import jax.numpy as jnp
from jax import lax
from jax.experimental import pallas as pl
from jax.experimental.pallas import tpu as pltpu

_MASK_VALUE = -1e30          # large finite negative; NaN-safe vs -inf
_MIB = 1024 * 1024


# --------------------------------------------------------------------------------------
# helpers
# --------------------------------------------------------------------------------------
def _round_up(x, m):
    return -(-x // m) * m


def _padded_tile_bytes(shape, itemsize):
    """VMEM footprint of one block, including (sublane, lane) padding."""
    *lead, s, l = shape
    n = 1
    for d in lead:
        n *= d
    sub = max(8, 32 // itemsize)          # 8 sublanes for f32, 16 for bf16
    return n * _round_up(s, sub) * _round_up(l, 128) * itemsize


def _vmem_limit_bytes(required):
    """Required bytes + 50% slack, never the whole physical per-core VMEM."""
    try:
        cap = int(getattr(pltpu.get_tpu_info(), "vmem_capacity_bytes", 64 * _MIB))
    except Exception:                      # pragma: no cover
        cap = 64 * _MIB                    # v7x per-core VMEM (the smallest)
    limit = max(int(required * 1.5), 32 * _MIB)
    return int(min(limit, cap - 8 * _MIB))


def _const_weight_spec(shape, index_map):
    """BlockSpec for a constant-index weight: DMA'd once, single-buffered."""
    try:
        return pl.BlockSpec(shape, index_map, pipeline_mode=pl.Buffered(1))
    except Exception:                      # pragma: no cover - older BlockSpec signature
        return pl.BlockSpec(shape, index_map)


# --------------------------------------------------------------------------------------
# kernel 1: fused QKV projection + one-time head-major relayout
# --------------------------------------------------------------------------------------
def _qkv_proj_kernel(x_ref, wqkv_ref, q_ref, k_ref, v_ref):
    """(TILE, K) @ (K, 3K) on the MXU (f32 accum), then split heads ONCE per tile."""
    tile = x_ref.shape[1]
    n_heads, _, hs = q_ref.shape[1:]
    k_dim = n_heads * hs

    xt = x_ref[0].astype(jnp.bfloat16)                               # (TILE, K)
    qkv = jnp.dot(xt, wqkv_ref[...],
                  preferred_element_type=jnp.float32)                # (TILE, 3K) f32

    q = qkv[:, :k_dim].reshape(tile, n_heads, hs)
    kk = qkv[:, k_dim:2 * k_dim].reshape(tile, n_heads, hs)
    v = qkv[:, 2 * k_dim:].reshape(tile, n_heads, hs)

    # Head-major outputs: the flash kernel never reshapes/transposes Q/K/V again.
    q_ref[0] = q.transpose(1, 0, 2).astype(q_ref.dtype)              # (H, TILE, hs)
    k_ref[0] = kk.transpose(1, 0, 2).astype(k_ref.dtype)             # (H, TILE, hs)
    v_ref[0] = v.transpose(1, 0, 2).astype(v_ref.dtype)              # (H, TILE, hs)


# --------------------------------------------------------------------------------------
# kernel 2: flash (online-softmax) causal attention + fused output projection
# --------------------------------------------------------------------------------------
def _flash_attn_kernel(q_blk_ref, kv_blk_ref,            # scalar prefetch (SMEM)
                       q_ref, k_ref, v_ref, wo_ref,      # inputs (VMEM)
                       out_ref,                          # output
                       m_sc, l_sc, acc_sc):              # scratch (f32)
    """grid = (batch, triangular_step); kv_blk <= q_blk only (causal skip built in)."""
    i = pl.program_id(1)
    qb = q_blk_ref[i]
    kb = kv_blk_ref[i]

    n_heads, tq, hs = acc_sc.shape
    tk = k_ref.shape[2]

    @pl.when(kb == 0)                      # first kv tile for this q tile
    def _():
        m_sc[...] = jnp.full(m_sc.shape, -jnp.inf, m_sc.dtype)
        l_sc[...] = jnp.zeros(l_sc.shape, l_sc.dtype)
        acc_sc[...] = jnp.zeros(acc_sc.shape, acc_sc.dtype)

    def _accumulate(masked):
        # Scores: (H,TQ,hs) x (H,TK,hs) -> (H,TQ,TK), f32 accumulation on the MXU.
        # 1/sqrt(K) is already folded into the Q columns of the fused weight.
        s = jnp.einsum('hqd,hkd->hqk', q_ref[0], k_ref[0],
                       preferred_element_type=jnp.float32)
        if masked:                          # only the diagonal tile needs the mask
            row = lax.broadcasted_iota(jnp.int32, (tq, tk), 0)
            col = lax.broadcasted_iota(jnp.int32, (tq, tk), 1)
            s = jnp.where((row >= col)[None, :, :], s, _MASK_VALUE)

        m_prev = m_sc[...]
        m_new = jnp.maximum(m_prev, s.max(axis=-1, keepdims=True))
        alpha = jnp.exp(m_prev - m_new)                               # f32, only (H,TQ,1)
        # Big exp is the binding EUP work for small hs: bf16 argument hits the
        # bf16 EUP path on v6e/v7x; p is consumed by the MXU as bf16 anyway.
        p = jnp.exp((s - m_new).astype(jnp.bfloat16))                 # (H,TQ,TK) bf16
        l_sc[...] = alpha * l_sc[...] + p.astype(jnp.float32).sum(axis=-1, keepdims=True)
        acc_sc[...] = alpha * acc_sc[...] + jnp.einsum(
            'hqk,hkd->hqd', p, v_ref[0], preferred_element_type=jnp.float32)
        m_sc[...] = m_new

    @pl.when(kb < qb)                       # strictly below the diagonal: no mask
    def _():
        _accumulate(masked=False)

    @pl.when(kb == qb)                      # diagonal tile == last kv tile for this q
    def _():
        _accumulate(masked=True)
        # Finalize: softmax normalization + concat heads + fused output projection.
        o = acc_sc[...] * pl.reciprocal(l_sc[...], approx=False)      # (H,TQ,hs) f32
        o = o.transpose(1, 0, 2).reshape(tq, n_heads * hs)            # (TQ, K)
        y = jnp.dot(o.astype(jnp.bfloat16), wo_ref[...],
                    preferred_element_type=jnp.float32)               # lane-dense, depth K
        out_ref[0] = y.astype(out_ref.dtype)


# --------------------------------------------------------------------------------------
# wrapper
# --------------------------------------------------------------------------------------
def multi_head_attention(x, wq, wk, wv, wo, n_heads, *, seq_tile=None):
    """x: (B, T, K); wq/wk/wv/wo: (K, K) PyTorch nn.Linear weights (out, in).

    Matches the module's forward in eval mode (dropout p=0.0 -> identity).
    K is ideally a multiple of 128 (otherwise lane-padded by the compiler).
    """
    b, t, k = x.shape
    assert k % n_heads == 0
    hs = k // n_heads

    if seq_tile is None:
        # 128 is MXU-native on v5e; on v6e/v7x pass seq_tile=256 to better fill the
        # 256x256 MXU and amortize per-step overhead (VMEM limit scales with it).
        seq_tile = t if t <= 128 else 128
    assert t % seq_tile == 0
    # bf16 sublane pack is 16; a full-extent tile is exempt (tiny test shapes).
    assert seq_tile == t or seq_tile % 16 == 0
    n_tiles = t // seq_tile

    # nn.Linear computes x @ W.T.  Fuse Q/K/V into one (K, 3K) matrix; fold the
    # 1/sqrt(K) scale (full embedding dim, exactly as in the module) into Wq.
    scale = 1.0 / math.sqrt(k)
    wqkv = jnp.concatenate([wq.T * scale, wk.T, wv.T], axis=1).astype(jnp.bfloat16)
    wo_m = wo.T.astype(jnp.bfloat16)

    # ---- kernel 1: fused QKV projection, head-major outputs ----
    qkv_blk = _padded_tile_bytes((n_heads, seq_tile, hs), 2)
    vmem_k1 = (2 * _padded_tile_bytes((seq_tile, k), x.dtype.itemsize)   # x (double-buf)
               + _padded_tile_bytes((k, 3 * k), 2)                       # wqkv (single-buf)
               + 2 * 3 * qkv_blk)                                        # q/k/v out (double-buf)
    q_p, k_p, v_p = pl.pallas_call(
        _qkv_proj_kernel,
        out_shape=(
            jax.ShapeDtypeStruct((b, n_heads, t, hs), jnp.bfloat16),
            jax.ShapeDtypeStruct((b, n_heads, t, hs), jnp.bfloat16),
            jax.ShapeDtypeStruct((b, n_heads, t, hs), jnp.bfloat16),
        ),
        grid_spec=pltpu.PrefetchScalarGridSpec(
            num_scalar_prefetch=0,
            grid=(b, n_tiles),
            in_specs=[
                pl.BlockSpec((1, seq_tile, k), lambda bi, ti: (bi, ti, 0)),
                _const_weight_spec((k, 3 * k), lambda bi, ti: (0, 0)),
            ],
            out_specs=[
                pl.BlockSpec((1, n_heads, seq_tile, hs), lambda bi, ti: (bi, 0, ti, 0)),
                pl.BlockSpec((1, n_heads, seq_tile, hs), lambda bi, ti: (bi, 0, ti, 0)),
                pl.BlockSpec((1, n_heads, seq_tile, hs), lambda bi, ti: (bi, 0, ti, 0)),
            ],
        ),
        compiler_params=pltpu.CompilerParams(
            dimension_semantics=("parallel", "parallel"),
            vmem_limit_bytes=_vmem_limit_bytes(vmem_k1),
        ),
    )(x, wqkv)

    # ---- lower-triangular (q_blk, kv_blk) enumeration for the flash kernel ----
    # Only kv <= q steps exist; the causally-dead upper half of the old rectangular
    # grid (and its per-step pipeline overhead) is never scheduled.
    tri = [(qi, ki) for qi in range(n_tiles) for ki in range(qi + 1)]
    q_blk = jnp.asarray([p[0] for p in tri], dtype=jnp.int32)
    kv_blk = jnp.asarray([p[1] for p in tri], dtype=jnp.int32)
    n_tri = len(tri)

    # ---- kernel 2: flash attention + fused output projection ----
    vmem_k2 = (2 * 3 * qkv_blk                                           # q/k/v blocks
               + 2 * _padded_tile_bytes((seq_tile, k), x.dtype.itemsize)  # out block
               + _padded_tile_bytes((k, k), 2)                            # wo (single-buf)
               + 2 * _padded_tile_bytes((n_heads, seq_tile, 1), 4)        # m, l
               + _padded_tile_bytes((n_heads, seq_tile, hs), 4))          # acc
    y = pl.pallas_call(
        _flash_attn_kernel,
        out_shape=jax.ShapeDtypeStruct((b, t, k), x.dtype),
        grid_spec=pltpu.PrefetchScalarGridSpec(
            num_scalar_prefetch=2,
            grid=(b, n_tri),
            in_specs=[
                pl.BlockSpec((1, n_heads, seq_tile, hs),
                             lambda bi, i, qb, kb: (bi, 0, qb[i], 0)),
                pl.BlockSpec((1, n_heads, seq_tile, hs),
                             lambda bi, i, qb, kb: (bi, 0, kb[i], 0)),
                pl.BlockSpec((1, n_heads, seq_tile, hs),
                             lambda bi, i, qb, kb: (bi, 0, kb[i], 0)),
                _const_weight_spec((k, k), lambda bi, i, qb, kb: (0, 0)),
            ],
            out_specs=pl.BlockSpec((1, seq_tile, k),
                                   lambda bi, i, qb, kb: (bi, qb[i], 0)),
            scratch_shapes=[
                pltpu.VMEM((n_heads, seq_tile, 1), jnp.float32),   # running max m
                pltpu.VMEM((n_heads, seq_tile, 1), jnp.float32),   # running denom l
                pltpu.VMEM((n_heads, seq_tile, hs), jnp.float32),  # running numerator
            ],
        ),
        compiler_params=pltpu.CompilerParams(
            # batch is the megacore-parallel axis; the triangle index is the
            # sequential reduction axis (per v7x guidance keep it innermost).
            dimension_semantics=("parallel", "arbitrary"),
            vmem_limit_bytes=_vmem_limit_bytes(vmem_k2),
        ),
    )(q_blk, kv_blk, q_p, k_p, v_p, wo_m)
    return y


# --------------------------------------------------------------------------------------
# pure-JAX reference (mirrors the PyTorch forward exactly, f32)
# --------------------------------------------------------------------------------------
def multi_head_attention_ref(x, wq, wk, wv, wo, n_heads):
    b, t, k = x.shape
    hs = k // n_heads
    Q = (x @ wq.T).reshape(b, t, n_heads, hs).transpose(0, 2, 1, 3)
    K = (x @ wk.T).reshape(b, t, n_heads, hs).transpose(0, 2, 1, 3)
    V = (x @ wv.T).reshape(b, t, n_heads, hs).transpose(0, 2, 1, 3)
    W = jnp.einsum('bhtd,bhsd->bhts', Q, K) / math.sqrt(k)
    mask = jnp.tril(jnp.ones((t, t)))[None, None]
    W = jnp.where(mask == 0, -jnp.inf, W)
    W = jax.nn.softmax(W, axis=-1)
    O = jnp.einsum('bhts,bhsd->bhtd', W, V)
    O = O.transpose(0, 2, 1, 3).reshape(b, t, k)
    return O @ wo.T


if __name__ == "__main__":
    # T=32 with seq_tile=16 -> 2 q tiles, 3 triangular flash steps (init / no-mask /
    # masked+finalize paths all exercised).
    B, T, K, H = 2, 32, 32, 4

    key = jax.random.PRNGKey(0)
    kx, kq, kk_, kv_, ko = jax.random.split(key, 5)

    x = jax.random.normal(kx, (B, T, K), dtype=jnp.float32)
    bound = 1.0 / math.sqrt(K)     # deterministic nn.Linear-style init
    wq = jax.random.uniform(kq, (K, K), jnp.float32, -bound, bound)
    wk = jax.random.uniform(kk_, (K, K), jnp.float32, -bound, bound)
    wv = jax.random.uniform(kv_, (K, K), jnp.float32, -bound, bound)
    wo = jax.random.uniform(ko, (K, K), jnp.float32, -bound, bound)

    y = multi_head_attention(x, wq, wk, wv, wo, H, seq_tile=16)
    y = jax.block_until_ready(y)

    y_ref = multi_head_attention_ref(x, wq, wk, wv, wo, H)
    # bf16 MXU operands + bf16-argument exp -> relaxed tolerance vs the f32 reference.
    assert jnp.allclose(y, y_ref, atol=3e-2, rtol=3e-2), "mismatch vs reference"

    print("KERNEL_OK")
</pallas_src>

<mosaic_0001>
module attributes {stable_mosaic.version = 11 : i64} {
  func.func @_qkv_proj_kernel(%arg0: i32, %arg1: i32, %arg2: memref<1x16x32xf32, #tpu.memory_space<vmem>>, %arg3: memref<32x96xbf16, #tpu.memory_space<vmem>>, %arg4: memref<1x4x16x8xbf16, #tpu.memory_space<vmem>>, %arg5: memref<1x4x16x8xbf16, #tpu.memory_space<vmem>>, %arg6: memref<1x4x16x8xbf16, #tpu.memory_space<vmem>>) attributes {dimension_semantics = [#tpu.dimension_semantics<parallel>, #tpu.dimension_semantics<parallel>], iteration_bounds = array<i64: 2, 2>, scalar_prefetch = 0 : i64, scratch_operands = 0 : i64, tpu.core_type = #tpu.core_type<tc>, window_params = [{transform_indices = @transform_0, window_bounds = array<i64: 1, 16, 32>}, {pipeline_mode = #tpu.pipeline_mode<synchronous>, transform_indices = @transform_1, window_bounds = array<i64: 32, 96>}, {transform_indices = @transform_2, window_bounds = array<i64: 1, 4, 16, 8>}, {transform_indices = @transform_3, window_bounds = array<i64: 1, 4, 16, 8>}, {transform_indices = @transform_4, window_bounds = array<i64: 1, 4, 16, 8>}]} {
    %c0 = arith.constant 0 : index
    %c0_0 = arith.constant 0 : index
    %c0_1 = arith.constant 0 : index
    %0 = vector.load %arg2[%c0, %c0_0, %c0_1] : memref<1x16x32xf32, #tpu.memory_space<vmem>>, vector<1x16x32xf32>
    %1 = vector.shape_cast %0 : vector<1x16x32xf32> to vector<16x32xf32>
    %2 = arith.truncf %1 : vector<16x32xf32> to vector<16x32xbf16>
    %c0_2 = arith.constant 0 : index
    %c0_3 = arith.constant 0 : index
    %3 = vector.load %arg3[%c0_2, %c0_3] : memref<32x96xbf16, #tpu.memory_space<vmem>>, vector<32x96xbf16>
    %cst = arith.constant dense<0.000000e+00> : vector<16x96xf32>
    %4 = tpu.matmul %2, %3, %cst {dimension_numbers = #tpu.dot_dimension_numbers<[1], [0], [0], [1], [0, 0, 1, 1], [], []>} : vector<16x32xbf16>, vector<32x96xbf16>, vector<16x96xf32> -> vector<16x96xf32>
    %5 = vector.extract_strided_slice %4 {offsets = [0, 0], sizes = [16, 32], strides = [1, 1]} : vector<16x96xf32> to vector<16x32xf32>
    %6 = vector.shape_cast %5 : vector<16x32xf32> to vector<16x4x8xf32>
    %7 = vector.extract_strided_slice %4 {offsets = [0, 32], sizes = [16, 32], strides = [1, 1]} : vector<16x96xf32> to vector<16x32xf32>
    %8 = vector.shape_cast %7 : vector<16x32xf32> to vector<16x4x8xf32>
    %9 = vector.extract_strided_slice %4 {offsets = [0, 64], sizes = [16, 32], strides = [1, 1]} : vector<16x96xf32> to vector<16x32xf32>
    %10 = vector.shape_cast %9 : vector<16x32xf32> to vector<16x4x8xf32>
    %11 = tpu.transpose %6, [1, 0, 2] : vector<16x4x8xf32> -> vector<4x16x8xf32>
    %12 = arith.truncf %11 : vector<4x16x8xf32> to vector<4x16x8xbf16>
    %c0_4 = arith.constant 0 : index
    %c0_5 = arith.constant 0 : index
    %c0_6 = arith.constant 0 : index
    %c0_7 = arith.constant 0 : index
    %13 = vector.load %arg4[%c0_4, %c0_5, %c0_6, %c0_7] : memref<1x4x16x8xbf16, #tpu.memory_space<vmem>>, vector<1x4x16x8xbf16>
    %14 = vector.shape_cast %13 : vector<1x4x16x8xbf16> to vector<4x16x8xbf16>
    %15 = vector.shape_cast %12 : vector<4x16x8xbf16> to vector<1x4x16x8xbf16>
    tpu.vector_store %arg4[%c0_4, %c0_5, %c0_6, %c0_7], %15 {strides = array<i32>} : memref<1x4x16x8xbf16, #tpu.memory_space<vmem>>, vector<1x4x16x8xbf16>,
    %16 = tpu.transpose %8, [1, 0, 2] : vector<16x4x8xf32> -> vector<4x16x8xf32>
    %17 = arith.truncf %16 : vector<4x16x8xf32> to vector<4x16x8xbf16>
    %c0_8 = arith.constant 0 : index
    %c0_9 = arith.constant 0 : index
    %c0_10 = arith.constant 0 : index
    %c0_11 = arith.constant 0 : index
    %18 = vector.load %arg5[%c0_8, %c0_9, %c0_10, %c0_11] : memref<1x4x16x8xbf16, #tpu.memory_space<vmem>>, vector<1x4x16x8xbf16>
    %19 = vector.shape_cast %18 : vector<1x4x16x8xbf16> to vector<4x16x8xbf16>
    %20 = vector.shape_cast %17 : vector<4x16x8xbf16> to vector<1x4x16x8xbf16>
    tpu.vector_store %arg5[%c0_8, %c0_9, %c0_10, %c0_11], %20 {strides = array<i32>} : memref<1x4x16x8xbf16, #tpu.memory_space<vmem>>, vector<1x4x16x8xbf16>,
    %21 = tpu.transpose %10, [1, 0, 2] : vector<16x4x8xf32> -> vector<4x16x8xf32>
    %22 = arith.truncf %21 : vector<4x16x8xf32> to vector<4x16x8xbf16>
    %c0_12 = arith.constant 0 : index
    %c0_13 = arith.constant 0 : index
    %c0_14 = arith.constant 0 : index
    %c0_15 = arith.constant 0 : index
    %23 = vector.load %arg6[%c0_12, %c0_13, %c0_14, %c0_15] : memref<1x4x16x8xbf16, #tpu.memory_space<vmem>>, vector<1x4x16x8xbf16>
    %24 = vector.shape_cast %23 : vector<1x4x16x8xbf16> to vector<4x16x8xbf16>
    %25 = vector.shape_cast %22 : vector<4x16x8xbf16> to vector<1x4x16x8xbf16>
    tpu.vector_store %arg6[%c0_12, %c0_13, %c0_14, %c0_15], %25 {strides = array<i32>} : memref<1x4x16x8xbf16, #tpu.memory_space<vmem>>, vector<1x4x16x8xbf16>,
    return
  }
  func.func @transform_0(%arg0: i32, %arg1: i32) -> (i32, i32, i32) {
    %c0_i32 = arith.constant 0 : i32
    %c0_i32_0 = arith.constant 0 : i32
    return %arg0, %arg1, %c0_i32 : i32, i32, i32
  }
  func.func @transform_1(%arg0: i32, %arg1: i32) -> (i32, i32) {
    %c0_i32 = arith.constant 0 : i32
    %c0_i32_0 = arith.constant 0 : i32
    %c0_i32_1 = arith.constant 0 : i32
    return %c0_i32, %c0_i32_0 : i32, i32
  }
  func.func @transform_2(%arg0: i32, %arg1: i32) -> (i32, i32, i32, i32) {
    %c0_i32 = arith.constant 0 : i32
    %c0_i32_0 = arith.constant 0 : i32
    %c0_i32_1 = arith.constant 0 : i32
    return %arg0, %c0_i32, %arg1, %c0_i32_0 : i32, i32, i32, i32
  }
  func.func @transform_3(%arg0: i32, %arg1: i32) -> (i32, i32, i32, i32) {
    %c0_i32 = arith.constant 0 : i32
    %c0_i32_0 = arith.constant 0 : i32
    %c0_i32_1 = arith.constant 0 : i32
    return %arg0, %c0_i32, %arg1, %c0_i32_0 : i32, i32, i32, i32
  }
  func.func @transform_4(%arg0: i32, %arg1: i32) -> (i32, i32, i32, i32) {
    %c0_i32 = arith.constant 0 : i32
    %c0_i32_0 = arith.constant 0 : i32
    %c0_i32_1 = arith.constant 0 : i32
    return %arg0, %c0_i32, %arg1, %c0_i32_0 : i32, i32, i32, i32
  }
}

</mosaic_0001>

<bundles_post_ra>
// kernel: tpu_custom_call.1
= control target key start
LH: loop header
LB: loop body
LE: loop exit
PB: predicated region body
PF: predicated region fallthrough
CT: control target
= control target key end

     0   :  { %s2486_s0 = inlined_call_operand.hbm [shape: f32[2,32,32], index: 0, kind: input, shape index: {}]   ;;  %s2487_s1 = inlined_call_operand.hbm [shape: bf16[32,96], index: 1, kind: input, shape index: {}]   ;;  %s2488_s2 = inlined_call_operand.vmem [shape: bf16[2,4,32,8], index: 2, kind: output, shape index: {0}]   ;;  %s2489_s3 = inlined_call_operand.vmem [shape: bf16[2,4,32,8], index: 3, kind: output, shape index: {1}]   ;;  %s2490_s4 = inlined_call_operand.vmem [shape: bf16[2,4,32,8], index: 4, kind: output, shape index: {2}]  }
   0x1   :  { %2493 = sst [smem:[#allocation12_spill]] %s2487_s1 }
   0x2   :  { %2494 = sst [smem:[#allocation13_spill]] %s2488_s2 }
   0x3   :  { %2495 = sst [smem:[#allocation14_spill]] %s2489_s3 }
   0x4   :  { %2496 = sst [smem:[#allocation15_spill]] %s2490_s4 }
   0x5   :  { %10 = vsyncpa [#allocation3], 0 }
   0x6   :  { %12 = vsyncpa [#allocation3 + $0x1], 0 }
   0x7   :  { %13 = vsyncpa [#allocation5], 0  ;;  %s2096_s15 = smov 0   ;;  %s2098_s16 = smov 0  }
   0x8   :  { %s2100_s17 = smov 0   ;;  %s2102_s18 = smov 0  }
   0x9   :  { %s2104_s19 = smov 0   ;;  %s2106_s20 = smov 0  }
   0xa   :  { %s2108_s21 = smov 0   ;;  %s2110_s22 = smov 0  }
   0xb LB: > { %s1730_s23 = sadd.s32 4294967295, %s2054_s22   ;;  %p53_p0 = scmp.ne.s32.totalorder %s2030_s16, %s2026_s15  ;;  %s2054_s22 = sphi %s2110_s22, %s19_s22   ;;  %s2050_s21 = sphi %s2108_s21, %s2517_s21   ;;  %s2046_s20 = sphi %s2106_s20, %s2516_s20   ;;  %s2042_s19 = sphi %s2104_s19, %s2515_s19   ;;  %s2038_s18 = sphi %s2102_s18, %s2514_s18   ;;  %s2034_s17 = sphi %s2100_s17, %s2513_s17   ;;  %s2030_s16 = sphi %s2098_s16, %s2512_s16   ;;  %s2026_s15 = sphi %s2096_s15, %s2511_s15  }
   0xc   : > { %p2136_p1 = scmp.eq.s32.totalorder %s1730_s23, 0  ;;  %p2140_p2 = scmp.eq.s32.totalorder %s1730_s23, 3 }
   0xd   : > { %p1732_p3 = scmp.ge.s32.totalorder %s2054_s22, 1  ;;  %p169_p4 = scmp.lt.s32.totalorder %s2054_s22, 5 }
   0xe   : > { %p2148_p5 = por %p2136_p1, %p53_p0  ;;  %s2056_s28 = smov [#allocation4]  }
   0xf   : > { %p2152_p6 = pnand %p1732_p3, %p169_p4  ;;  %s181_s29 = sshll.u32 %s2056_s28, 4  ;;  %s182_s29 = int_to_ptr.vmem [resolvable:$true] %s181_s29 }
  0x10   : > { %s2499_s26 = scalar_select %p2148_p5, 1, 0 }
  0x11   : > { %p1839_p7 = pneg %p2152_p6  ;;  %s1941_s30 = scalar_lea.vmem %s182_s29, 256 }
  0x12   : > { %p1942_p10 = scmp.ne.s32.totalorder %s182_s29, %s1941_s30  ;;  %p1949_p13 = scmp.lt.s32.totalorder %s182_s29, %s182_s29 }
  0x13   : > { %p1840_p8 = pnand %p1839_p7, %p2136_p1  ;;  %p1950_p0 = scmp.lt.s32.totalorder %s1941_s30, %s1941_s30 }
  0x15   : > { %p1932_p9 = pneg %p1840_p8  ;;  %p1951_p5 = por %p1950_p0, %p1949_p13 }
  0x17   : > { %p1944_p11 = pnand %p1942_p10, %p1932_p9 }
  0x19   : > { %p1945_p12 = pneg %p1944_p11 }
  0x1b   : > { %p1952_p3 = pnand %p1951_p5, %p1945_p12 }
  0x1d   : > { %1955 = shalt.err (!%p1952_p3)
}
  0x1e   : > { %s2057_s5 = smov 64   ;;  %s2058_s6 = smov 4  }
  0x1f   : > { %s2501_s1 = sld [smem:[#allocation12_spill]]  ;;  %s28_s9 = sadd.s32 1, %s2046_s20 }
  0x20   : > { %s31_s10 = sadd.s32 1, %s2050_s21  ;;  %p29_p4 = scmp.ge.s32.totalorder %s28_s9, 2 }
  0x21   : > { %s40_s11 = sadd.s32 1, %s2034_s17  ;;  %p47_p5 = scmp.ne.s32.totalorder %s2034_s17, %s2030_s16 }
  0x22   : > { %p48_p7 = scmp.eq.s32.totalorder %s2054_s22, 0  ;;  %s2519_s9 = smov (%p29_p4, %s28_s9), 0 }
  0x23   : > { %2502 = sst [smem:[#allocation11_spill]] %s2519_s9  ;;  %s2521_s10 = smov (!%p29_p4, %s31_s10), %s2050_s21 }
  0x24   : > { %s36_s12 = ssub.s32 %s2046_s20, %s2519_s9  ;;  %p2174_p9 = por %p48_p7, %p47_p5 }
  0x25   : > { %1842 = dma.hbm_to_vmem [thread:$0]  (!%p1840_p8), %s2501_s1, 256, %s182_s29, [#allocation5], %s2057_s5, %s2057_s5, %s2058_s6  }
  0x26   : > { %p33_p8 = scmp.ge.s32.totalorder %s2521_s10, 2  ;;  %p2180_p10 = por %p2140_p2, %p47_p5 }
  0x27   : > { %p1848_p11 = scmp.lt.s32.totalorder %s2054_s22, 4  ;;  %s195_s15 = sand.u32 1, %s2034_s17  }
  0x28   : > { %s2523_s10 = smov (%p33_p8, %s2521_s10), 0  ;;  %s1735_s23 = sshll.u32 %s195_s15, 4 }
  0x29   : > { %s35_s28 = ssub.s32 %s2050_s21, %s2523_s10  ;;  %s1736_s30 = sshll.u32 %s2046_s20, 1 }
  0x2a   : > { %s37_s29 = sor.u32 %s36_s12, %s35_s28  ;;  %s1737_s5 = sshll.u32 %s2050_s21, 2 }
  0x2b   : > { %p38_p12 = scmp.eq.s32.totalorder %s37_s29, 0  ;;  %s205_s6 = sadd.s32 %s1737_s5, %s1736_s30 }
  0x2c   : > { %s199_s7 = scalar_lea.vmem [#allocation2], %s1735_s23  ;;  %s1738_s1 = sshll.u32 %s205_s6, 7 }
  0x2d   : > { %s208_s25 = sshll.u32 %s199_s7, 4  ;;  %s207_s3 = scalar_lea.hbm %s2486_s0, %s1738_s1  ;;  %s209_s25 = int_to_ptr.vmem [resolvable:$true] %s208_s25 }
  0x2e   : > { %s2193_s8 = scalar_select %p38_p12, %s2034_s17, %s40_s11  }
  0x2f   : > { %p2202_p2 = pnand %p1848_p11, %p2174_p9  ;;  %s196_s12 = scalar_lea.sflag [#allocation3], %s195_s15 }
  0x30   : > { %s1969_s23 = scalar_lea.vmem %s209_s25, 256  ;;  %s2059_s11 = smov [#allocation2]  }
  0x31   : > { %p1958_p13 = pneg %p2202_p2  ;;  %p1970_p0 = scmp.ne.s32.totalorder %s209_s25, %s1969_s23 }
  0x32   : > { %s1974_s28 = sshll.u32 %s2059_s11, 4  ;;  %s1975_s28 = int_to_ptr.vmem [resolvable:$false] %s1974_s28 }
  0x33   : > { %p1972_p3 = pnand %p1970_p0, %p1958_p13  ;;  %s1976_s29 = scalar_lea.vmem %s1975_s28, 512 }
  0x34   : > { %p1977_p5 = scmp.lt.s32.totalorder %s209_s25, %s1975_s28  ;;  %p1978_p7 = scmp.lt.s32.totalorder %s1976_s29, %s1969_s23 }
  0x35   : > { %p1973_p4 = pneg %p1972_p3 }
  0x36   : > { %p1979_p8 = por %p1978_p7, %p1977_p5 }
  0x38   : > { %p1980_p12 = pnand %p1979_p8, %p1973_p4 }
  0x3a   : > { %1983 = shalt.err (!%p1980_p12)
}
  0x3b   : > { %s2060_s1 = smov 128   ;;  %s2061_s4 = smov 8  }
  0x3c   : > { %1846 = dma.hbm_to_vmem [thread:$0]  (!%p2202_p2), %s207_s3, 256, %s209_s25, %s196_s12, %s2060_s1, %s2060_s1, %s2061_s4  }
  0x3d   : > { %220 = sbr.rel (%p2152_p6) target bundleno = 576 (0x240), region = 28  ;;  %s2213_s9 = sand.u32 (!%p2152_p6), 1, %s2030_s16  }
  0x3e   : > { %s1740_s13 = sshll.u32 (!%p2152_p6), %s2213_s9, 4  ;;  %s223_s15 = scalar_lea.sflag (!%p2152_p6), [#allocation3], %s2213_s9 }
  0x3f   : > { %s226_s30 = scalar_lea.vmem (!%p2152_p6), [#allocation2], %s1740_s13  ;;  %p2506_p9 = scmp.ne.s32.totalorder (!%p2152_p6), %s2499_s26, 0 }
  0x42   : > { %2017 = dma.done.wait (%p2506_p9), %s223_s15, 256  }
  0x43   : > { %2019 = vsyncadd (%p2506_p9), %s223_s15, 4294967040 }
  0x44   : > { %2021 = dma.done.wait (%p2136_p1), [#allocation5], 256  }
  0x45   : > { %2023 = vsyncadd (%p2136_p1), [#allocation5], 4294967040  ;;  %v2062_v0 = vmov 0.0   ;;  %vm2063_vm0 = vmmov 0   ;;  %v1928_v1 = vld [vmem:[#allocation4 + $0x8] sm:$0xff]   ;;  %v1929_v2 = vld [vmem:[#allocation4] sm:$0xff]   ;;  %v356_v12 = vlaneseq }
  0x46   : > { %1825 = vmatprep.subr.bf16.mxu0 %v2062_v0  ;;  %1829 = vmatprep.mubr.msk.bf16.mxu0 %vm2063_vm0, %v2062_v0  ;;  %v267_v3 = vld [vmem:[%s226_s30] sm:$0xff]  ;;  %v268_v4 = vld [vmem:[%s226_s30 + $0x8] sm:$0xff]  ;;  %vm286_vm1 = vcmask 261120   ;;  %s2064_s2 = smov 112   ;;  %s2065_s3 = smov 120   ;;  %vm975_vm2 = vcmask 60416  }
  0x47   : > { %1826 = vmatpush3.bf16.msra.mxu0 %v1928_v1  ;;  %v269_v5 = vpack.c.bf16 %v268_v4, %v267_v3  ;;  %s2066_s24 = smov 104   ;;  %s2067_s26 = smov 96   ;;  %v2069_v10 = vmov 1983009808   ;;  %v2070_v15 = vmov 1934713408  }
  0x48   : > { %1827 = vmatprep.subr.bf16.mxu0 %v2062_v0  ;;  %s2068_s27 = smov 64   ;;  %v354_v11 = vunpack.c.l.s4 %v2069_v10  ;;  %v386_v16 = vunpack.c.l.s4 %v2070_v15  ;;  %v357_v18 = vshrl.u32 %v356_v12, 7  ;;  %s2280_s5 = sshll.u32 %s2213_s9, 5 }
  0x49   : > { %s2293_s6 = scalar_lea.vmem [#allocation6], %s2280_s5  ;;  %s2352_s7 = scalar_lea.vmem [#allocation7], %s2280_s5 }
  0x4a   : > { %v355_v17 = vunpack.c.0.s8 %v354_v11  ;;  %v387_v23 = vunpack.c.0.s8 %v386_v16  ;;  %s2411_s25 = scalar_lea.vmem [#allocation8], %s2280_s5  ;;  %s1787_s12 = sshll.u32 (%p2180_p10), %s2038_s18, 1 }
  0x4b   : > { %1828 = vmatpush3.bf16.msra.mxu0 %v1929_v2  ;;  %s1788_s23 = sshll.u32 (%p2180_p10), %s2042_s19, 4  ;;  %s2507_s4 = sld [smem:[#allocation13_spill]] (%p2180_p10) }
  0x4c   : > { %v2236_v24 = vsub.s32 %v355_v17, %v357_v18  ;;  %v2246_v35 = vsub.s32 %v387_v23, %v357_v18  ;;  %s1353_s11 = sadd.s32 (%p2180_p10), %s1788_s23, %s1787_s12 }
  0x4d   : > { %s1789_s28 = sshll.u32 (%p2180_p10), %s1353_s11, 2 }
  0x4e   : > { %1830 = vmatmul.mubr.msk.bf16.vlgmr.msra.gmra.mxu0 %vm286_vm1, %v269_v5 }
  0x51   : > { %s1355_s9 = scalar_lea.vmem (%p2180_p10), %s2507_s4, %s1789_s28 }
 0x10e   : > { %v324_v6 = vpop.f32.mrf.mxu0 }
 0x10f   : > { %339 = vrot.lane.b32.xlu1 %v324_v6, %s2064_s2  ;;  %333 = vrot.lane.b32.xlu0 %v324_v6, %s2065_s3 }
 0x110   : > { %v1831_v7 = vpop.f32.mrf.mxu0 }
 0x112   : > { %v327_v8 = vpop.f32.mrf.mxu0 }
 0x113   : > { %341 = vrot.lane.b32.xlu1 %v327_v8, %s2064_s2  ;;  %335 = vrot.lane.b32.xlu0 %v327_v8, %s2065_s3 }
 0x114   : > { %v1832_v9 = vpop.f32.mrf.mxu0 }
 0x117   : > { %347 = vrot.lane.b32.xlu1 %v327_v8, %s2066_s24  ;;  %345 = vrot.lane.b32.xlu0 %v324_v6, %s2066_s24 }
 0x11b   : > { %489 = vrot.lane.b32.xlu1 %v327_v8, %s2067_s26  ;;  %487 = vrot.lane.b32.xlu0 %v324_v6, %s2067_s26 }
 0x11f   : > { %649 = vrot.lane.b32.xlu1 %v327_v8, %s2068_s27  ;;  %647 = vrot.lane.b32.xlu0 %v324_v6, %s2068_s27 }
 0x181   : > { %v340_v13 = vpop.permute.xlu1 %339  ;;  %v334_v14 = vpop.permute.xlu0 %333 }
 0x182   : > { %491 = vrot.lane.b32.xlu0 %v334_v14, %s2067_s26  ;;  %v351_v25 = vcombine.low %v324_v6, %v340_v13  ;;  %v352_v26 = vcombine.high %v324_v6, %v340_v13 }
 0x184   : > { %v359_v40 = vrot.slane %v351_v25, %v2236_v24  ;;  %v366_v41 = vrot.slane %v352_v26, %v2236_v24 }
 0x185   : > { %v2230_v19 = vpop.permute.xlu1 %341  ;;  %v336_v20 = vpop.permute.xlu0 %335 }
 0x186   : > { %495 = vrot.lane.b32.xlu0 %v340_v13, %s2067_s26  ;;  %493 = vrot.lane.b32.xlu1 %v336_v20, %s2067_s26  ;;  %v419_v21 = vcombine.low %v327_v8, %v2230_v19  ;;  %v420_v22 = vcombine.high %v327_v8, %v2230_v19 }
 0x188   : > { %v427_v33 = vrot.slane %v419_v21, %v2236_v24  ;;  %v434_v34 = vrot.slane %v420_v22, %v2236_v24 }
 0x189   : > { %v2238_v27 = vpop.permute.xlu1 %347  ;;  %v346_v28 = vpop.permute.xlu0 %345 }
 0x18a   : > { %v435_v29 = vcombine.low %v336_v20, %v2238_v27  ;;  %v436_v30 = vcombine.high %v336_v20, %v2238_v27  ;;  %v367_v31 = vcombine.low %v334_v14, %v346_v28  ;;  %v368_v32 = vcombine.high %v334_v14, %v346_v28  ;;  %497 = vrot.lane.b32.xlu1 %v2230_v19, %s2067_s26 }
 0x18b   : > { %499 = vrot.lane.b32.xlu0 %v346_v28, %s2067_s26 }
 0x18c   : > { %v443_v36 = vrot.slane %v435_v29, %v2236_v24  ;;  %v450_v37 = vrot.slane %v436_v30, %v2236_v24  ;;  %v375_v38 = vrot.slane %v367_v31, %v2236_v24  ;;  %v382_v39 = vrot.slane %v368_v32, %v2236_v24 }
 0x18e   : > { %v451_v42 = vcombine.low %v427_v33, %v443_v36  ;;  %v452_v43 = vcombine.high %v427_v33, %v443_v36  ;;  %v467_v44 = vcombine.low %v434_v34, %v450_v37  ;;  %v468_v45 = vcombine.high %v434_v34, %v450_v37  ;;  %501 = vrot.lane.b32.xlu1 %v2238_v27, %s2067_s26 }
 0x18f   : > { %v383_v46 = vcombine.low %v359_v40, %v375_v38  ;;  %v384_v47 = vcombine.high %v359_v40, %v375_v38  ;;  %v399_v48 = vcombine.low %v366_v41, %v382_v39  ;;  %v400_v49 = vcombine.high %v366_v41, %v382_v39  ;;  %651 = vrot.lane.b32.xlu0 %v334_v14, %s2068_s27 }
 0x190   : > { %v459_v50 = vrot.slane %v451_v42, %v2246_v35  ;;  %v466_v51 = vrot.slane %v452_v43, %v2246_v35  ;;  %v475_v52 = vrot.slane %v467_v44, %v2246_v35  ;;  %v482_v53 = vrot.slane %v468_v45, %v2246_v35  ;;  %v490_v45 = vpop.permute.xlu1 %489 }
 0x191   : > { %v391_v54 = vrot.slane %v383_v46, %v2246_v35  ;;  %v398_v55 = vrot.slane %v384_v47, %v2246_v35  ;;  %v407_v56 = vrot.slane %v399_v48, %v2246_v35  ;;  %v414_v57 = vrot.slane %v400_v49, %v2246_v35 }
 0x192   : > { %v875_v58 = vcombine.low %v459_v50, %v466_v51  ;;  %v1750_v59 = vcombine.high %v459_v50, %v466_v51  ;;  %v891_v60 = vcombine.low %v475_v52, %v482_v53  ;;  %v1751_v61 = vcombine.high %v475_v52, %v482_v53  ;;  %653 = vrot.lane.b32.xlu1 %v336_v20, %s2068_s27 }
 0x193   : > { %v807_v62 = vcombine.low %v391_v54, %v398_v55  ;;  %v1748_v63 = vcombine.high %v391_v54, %v398_v55  ;;  %v823_v0 = vcombine.low %v407_v56, %v414_v57  ;;  %v1749_v1 = vcombine.high %v407_v56, %v414_v57  ;;  %655 = vrot.lane.b32.xlu0 %v340_v13, %s2068_s27 }
 0x194   : > { %v882_v2 = vrot.slane %v875_v58, %v2236_v24  ;;  %v890_v3 = vrot.slane %v1750_v59, %v2236_v24  ;;  %v898_v4 = vrot.slane %v891_v60, %v2236_v24  ;;  %v906_v5 = vrot.slane %v1751_v61, %v2236_v24  ;;  %v2313_v47 = vpop.permute.xlu1 %649 }
 0x195   : > { %v814_v6 = vrot.slane %v807_v62, %v2236_v24  ;;  %v822_v7 = vrot.slane %v1748_v63, %v2236_v24  ;;  %v830_v8 = vrot.slane %v823_v0, %v2236_v24  ;;  %v838_v9 = vrot.slane %v1749_v1, %v2236_v24 }
 0x196   : > { %v907_v10 = vcombine.low %v882_v2, %v890_v3  ;;  %v908_v11 = vcombine.high %v882_v2, %v890_v3  ;;  %v923_v12 = vcombine.low %v898_v4, %v906_v5  ;;  %v924_v13 = vcombine.high %v898_v4, %v906_v5  ;;  %657 = vrot.lane.b32.xlu1 %v2230_v19, %s2068_s27 }
 0x197   : > { %v839_v14 = vcombine.low %v814_v6, %v822_v7  ;;  %v840_v15 = vcombine.high %v814_v6, %v822_v7  ;;  %v855_v16 = vcombine.low %v830_v8, %v838_v9  ;;  %v856_v17 = vcombine.high %v830_v8, %v838_v9  ;;  %659 = vrot.lane.b32.xlu0 %v346_v28, %s2068_s27 }
 0x198   : > { %v915_v18 = vrot.slane %v907_v10, %v2246_v35  ;;  %v922_v20 = vrot.slane %v908_v11, %v2246_v35  ;;  %v931_v21 = vrot.slane %v923_v12, %v2246_v35  ;;  %v938_v22 = vrot.slane %v924_v13, %v2246_v35 }
 0x199   : > { %v847_v23 = vrot.slane %v839_v14, %v2246_v35  ;;  %v854_v19 = vrot.slane %v840_v15, %v2246_v35  ;;  %v863_v25 = vrot.slane %v855_v16, %v2246_v35  ;;  %v870_v26 = vrot.slane %v856_v17, %v2246_v35 }
 0x19a   : > { %v939_v29 = vcombine.low %v915_v18, %v931_v21  ;;  %v940_v28 = vcombine.high %v915_v18, %v931_v21  ;;  %v941_v30 = vcombine.low %v922_v20, %v938_v22  ;;  %v942_v31 = vcombine.high %v922_v20, %v938_v22  ;;  %661 = vrot.lane.b32.xlu1 %v2238_v27, %s2068_s27  ;;  %v488_v27 = vpop.permute.xlu0 %487 }
 0x19b   : > { %v871_v32 = vcombine.low %v847_v23, %v863_v25  ;;  %v872_v33 = vcombine.high %v847_v23, %v863_v25  ;;  %v873_v34 = vcombine.low %v854_v19, %v870_v26  ;;  %v874_v36 = vcombine.high %v854_v19, %v870_v26 }
 0x19c   : > { %v1799_v37 = vpack.c.bf16 %v939_v29, %v939_v29  ;;  %v1801_v38 = vpack.c.bf16 %v940_v28, %v940_v28  ;;  %v1803_v39 = vpack.c.bf16 %v941_v30, %v941_v30  ;;  %v1805_v40 = vpack.c.bf16 %v942_v31, %v942_v31 }
 0x19d   : > { %v1798_v41 = vpack.c.bf16 %v871_v32, %v871_v32  ;;  %v1800_v42 = vpack.c.bf16 %v872_v33, %v872_v33  ;;  %v1802_v43 = vpack.c.bf16 %v873_v34, %v873_v34  ;;  %v1804_v44 = vpack.c.bf16 %v874_v36, %v874_v36 }
 0x19e   : > { %977 = vst.msk [vmem:[%s2293_s6 + $0x4] sm:$0xf] %vm975_vm2, %v1799_v37  ;;  %979 = vst.msk [vmem:[%s2293_s6 + $0xc] sm:$0xf] %vm975_vm2, %v1801_v38  ;;  %v2311_v46 = vpop.permute.xlu0 %647 }
 0x19f   : > { %981 = vst.msk [vmem:[%s2293_s6 + $0x14] sm:$0xf] %vm975_vm2, %v1803_v39  ;;  %983 = vst.msk [vmem:[%s2293_s6 + $0x1c] sm:$0xf] %vm975_vm2, %v1805_v40 }
 0x1a0   : > { %976 = vst.msk [vmem:[%s2293_s6] sm:$0xf] %vm975_vm2, %v1798_v41  ;;  %978 = vst.msk [vmem:[%s2293_s6 + $0x8] sm:$0xf] %vm975_vm2, %v1800_v42 }
 0x1a1   : > { %980 = vst.msk [vmem:[%s2293_s6 + $0x10] sm:$0xf] %vm975_vm2, %v1802_v43  ;;  %982 = vst.msk [vmem:[%s2293_s6 + $0x18] sm:$0xf] %vm975_vm2, %v1804_v44 }
 0x1f4   : > { %v492_v48 = vpop.permute.xlu0 %491 }
 0x1f8   : > { %v494_v49 = vpop.permute.xlu1 %493  ;;  %v496_v50 = vpop.permute.xlu0 %495 }
 0x1f9   : > { %v511_v51 = vcombine.low %v488_v27, %v496_v50  ;;  %v512_v52 = vcombine.high %v488_v27, %v496_v50 }
 0x1fb   : > { %v519_v59 = vrot.slane %v511_v51, %v2236_v24  ;;  %v526_v60 = vrot.slane %v512_v52, %v2236_v24 }
 0x1fc   : > { %v498_v53 = vpop.permute.xlu1 %497 }
 0x1fd   : > { %v500_v54 = vpop.permute.xlu0 %499  ;;  %v579_v57 = vcombine.low %v490_v45, %v498_v53  ;;  %v580_v58 = vcombine.high %v490_v45, %v498_v53 }
 0x1fe   : > { %v527_v55 = vcombine.low %v492_v48, %v500_v54  ;;  %v528_v56 = vcombine.high %v492_v48, %v500_v54 }
 0x1ff   : > { %v587_v6 = vrot.slane %v579_v57, %v2236_v24  ;;  %v594_v7 = vrot.slane %v580_v58, %v2236_v24 }
 0x200   : > { %v535_v61 = vrot.slane %v527_v55, %v2236_v24  ;;  %v542_v62 = vrot.slane %v528_v56, %v2236_v24  ;;  %v502_v63 = vpop.permute.xlu1 %501 }
 0x201   : > { %v595_v0 = vcombine.low %v494_v49, %v502_v63  ;;  %v596_v1 = vcombine.high %v494_v49, %v502_v63  ;;  %v2327_v23 = vpop.permute.xlu0 %651 }
 0x202   : > { %v543_v2 = vcombine.low %v519_v59, %v535_v61  ;;  %v544_v3 = vcombine.high %v519_v59, %v535_v61  ;;  %v559_v4 = vcombine.low %v526_v60, %v542_v62  ;;  %v560_v5 = vcombine.high %v526_v60, %v542_v62 }
 0x203   : > { %v603_v8 = vrot.slane %v595_v0, %v2236_v24  ;;  %v610_v9 = vrot.slane %v596_v1, %v2236_v24 }
 0x204   : > { %v551_v10 = vrot.slane %v543_v2, %v2246_v35  ;;  %v558_v11 = vrot.slane %v544_v3, %v2246_v35  ;;  %v567_v12 = vrot.slane %v559_v4, %v2246_v35  ;;  %v574_v13 = vrot.slane %v560_v5, %v2246_v35  ;;  %v2329_v19 = vpop.permute.xlu1 %653 }
 0x205   : > { %v611_v14 = vcombine.low %v587_v6, %v603_v8  ;;  %v612_v15 = vcombine.high %v587_v6, %v603_v8  ;;  %v627_v16 = vcombine.low %v594_v7, %v610_v9  ;;  %v628_v17 = vcombine.high %v594_v7, %v610_v9  ;;  %v656_v52 = vpop.permute.xlu0 %655 }
 0x206   : > { %v984_v18 = vcombine.low %v551_v10, %v558_v11  ;;  %v1760_v20 = vcombine.high %v551_v10, %v558_v11  ;;  %v1000_v21 = vcombine.low %v567_v12, %v574_v13  ;;  %v1761_v22 = vcombine.high %v567_v12, %v574_v13 }
 0x207   : > { %v619_v25 = vrot.slane %v611_v14, %v2246_v35  ;;  %v626_v26 = vrot.slane %v612_v15, %v2246_v35  ;;  %v635_v29 = vrot.slane %v627_v16, %v2246_v35  ;;  %v642_v28 = vrot.slane %v628_v17, %v2246_v35 }
 0x208   : > { %v991_v30 = vrot.slane %v984_v18, %v2236_v24  ;;  %v999_v31 = vrot.slane %v1760_v20, %v2236_v24  ;;  %v1007_v32 = vrot.slane %v1000_v21, %v2236_v24  ;;  %v1015_v33 = vrot.slane %v1761_v22, %v2236_v24  ;;  %v658_v53 = vpop.permute.xlu1 %657 }
 0x209   : > { %v1052_v34 = vcombine.low %v619_v25, %v626_v26  ;;  %v1762_v36 = vcombine.high %v619_v25, %v626_v26  ;;  %v1068_v37 = vcombine.low %v635_v29, %v642_v28  ;;  %v1763_v38 = vcombine.high %v635_v29, %v642_v28  ;;  %v660_v12 = vpop.permute.xlu0 %659 }
 0x20a   : > { %v1016_v39 = vcombine.low %v991_v30, %v999_v31  ;;  %v1017_v40 = vcombine.high %v991_v30, %v999_v31  ;;  %v1032_v41 = vcombine.low %v1007_v32, %v1015_v33  ;;  %v1033_v42 = vcombine.high %v1007_v32, %v1015_v33 }
 0x20b   : > { %v1059_v43 = vrot.slane %v1052_v34, %v2236_v24  ;;  %v1067_v44 = vrot.slane %v1762_v36, %v2236_v24  ;;  %v1075_v27 = vrot.slane %v1068_v37, %v2236_v24  ;;  %v1083_v45 = vrot.slane %v1763_v38, %v2236_v24 }
 0x20c   : > { %v1024_v48 = vrot.slane %v1016_v39, %v2246_v35  ;;  %v1031_v49 = vrot.slane %v1017_v40, %v2246_v35  ;;  %v1040_v50 = vrot.slane %v1032_v41, %v2246_v35  ;;  %v1047_v51 = vrot.slane %v1033_v42, %v2246_v35  ;;  %v662_v13 = vpop.permute.xlu1 %661 }
 0x20d   : > { %v1084_v54 = vcombine.low %v1059_v43, %v1067_v44  ;;  %v1085_v55 = vcombine.high %v1059_v43, %v1067_v44  ;;  %v1100_v56 = vcombine.low %v1075_v27, %v1083_v45  ;;  %v1101_v57 = vcombine.high %v1075_v27, %v1083_v45 }
 0x20e   : > { %v1048_v58 = vcombine.low %v1024_v48, %v1040_v50  ;;  %v1049_v59 = vcombine.high %v1024_v48, %v1040_v50  ;;  %v1050_v60 = vcombine.low %v1031_v49, %v1047_v51  ;;  %v1051_v61 = vcombine.high %v1031_v49, %v1047_v51 }
 0x20f   : > { %v1092_v62 = vrot.slane %v1084_v54, %v2246_v35  ;;  %v1099_v63 = vrot.slane %v1085_v55, %v2246_v35  ;;  %v1108_v0 = vrot.slane %v1100_v56, %v2246_v35  ;;  %v1115_v1 = vrot.slane %v1101_v57, %v2246_v35 }
 0x210   : > { %v1806_v2 = vpack.c.bf16 %v1048_v58, %v1048_v58  ;;  %v1808_v3 = vpack.c.bf16 %v1049_v59, %v1049_v59  ;;  %v1810_v4 = vpack.c.bf16 %v1050_v60, %v1050_v60  ;;  %v1812_v5 = vpack.c.bf16 %v1051_v61, %v1051_v61 }
 0x211   : > { %v1116_v6 = vcombine.low %v1092_v62, %v1108_v0  ;;  %v1117_v7 = vcombine.high %v1092_v62, %v1108_v0  ;;  %v1118_v8 = vcombine.low %v1099_v63, %v1115_v1  ;;  %v1119_v9 = vcombine.high %v1099_v63, %v1115_v1 }
 0x212   : > { %1152 = vst.msk [vmem:[%s2352_s7] sm:$0xf] %vm975_vm2, %v1806_v2  ;;  %1154 = vst.msk [vmem:[%s2352_s7 + $0x8] sm:$0xf] %vm975_vm2, %v1808_v3  ;;  %v671_v10 = vcombine.low %v2311_v46, %v656_v52  ;;  %v672_v11 = vcombine.high %v2311_v46, %v656_v52  ;;  %v739_v18 = vcombine.low %v2313_v47, %v658_v53 }
 0x213   : > { %1156 = vst.msk [vmem:[%s2352_s7 + $0x10] sm:$0xf] %vm975_vm2, %v1810_v4  ;;  %1158 = vst.msk [vmem:[%s2352_s7 + $0x18] sm:$0xf] %vm975_vm2, %v1812_v5  ;;  %v1807_v14 = vpack.c.bf16 %v1116_v6, %v1116_v6  ;;  %v1809_v15 = vpack.c.bf16 %v1117_v7, %v1117_v7  ;;  %v1811_v16 = vpack.c.bf16 %v1118_v8, %v1118_v8 }
 0x214   : > { %v1813_v17 = vpack.c.bf16 %v1119_v9, %v1119_v9  ;;  %v740_v20 = vcombine.high %v2313_v47, %v658_v53  ;;  %v687_v46 = vcombine.low %v2327_v23, %v660_v12  ;;  %v688_v21 = vcombine.high %v2327_v23, %v660_v12 }
 0x215   : > { %1153 = vst.msk [vmem:[%s2352_s7 + $0x4] sm:$0xf] %vm975_vm2, %v1807_v14  ;;  %1155 = vst.msk [vmem:[%s2352_s7 + $0xc] sm:$0xf] %vm975_vm2, %v1809_v15  ;;  %v755_v22 = vcombine.low %v2329_v19, %v662_v13  ;;  %v756_v25 = vcombine.high %v2329_v19, %v662_v13  ;;  %v679_v26 = vrot.slane %v671_v10, %v2236_v24 }
 0x216   : > { %1157 = vst.msk [vmem:[%s2352_s7 + $0x14] sm:$0xf] %vm975_vm2, %v1811_v16  ;;  %1159 = vst.msk [vmem:[%s2352_s7 + $0x1c] sm:$0xf] %vm975_vm2, %v1813_v17  ;;  %v686_v47 = vrot.slane %v672_v11, %v2236_v24  ;;  %v695_v29 = vrot.slane %v687_v46, %v2236_v24  ;;  %v702_v28 = vrot.slane %v688_v21, %v2236_v24 }
 0x217   : > { %v763_v30 = vrot.slane %v755_v22, %v2236_v24  ;;  %v770_v31 = vrot.slane %v756_v25, %v2236_v24  ;;  %v747_v32 = vrot.slane %v739_v18, %v2236_v24  ;;  %v754_v23 = vrot.slane %v740_v20, %v2236_v24 }
 0x218   : > { %v703_v33 = vcombine.low %v679_v26, %v695_v29  ;;  %v704_v34 = vcombine.high %v679_v26, %v695_v29  ;;  %v719_v36 = vcombine.low %v686_v47, %v702_v28  ;;  %v720_v19 = vcombine.high %v686_v47, %v702_v28 }
 0x219   : > { %v771_v37 = vcombine.low %v747_v32, %v763_v30  ;;  %v772_v38 = vcombine.high %v747_v32, %v763_v30  ;;  %v787_v39 = vcombine.low %v754_v23, %v770_v31  ;;  %v788_v40 = vcombine.high %v754_v23, %v770_v31 }
 0x21a   : > { %v711_v41 = vrot.slane %v703_v33, %v2246_v35  ;;  %v718_v42 = vrot.slane %v704_v34, %v2246_v35  ;;  %v727_v43 = vrot.slane %v719_v36, %v2246_v35  ;;  %v734_v44 = vrot.slane %v720_v19, %v2246_v35  ;;  %v1376_v34 = vld [vmem:[%s2293_s6 + $0x8] sm:$0xff] (%p2180_p10)   ;;  %v1380_v36 = vld [vmem:[%s2293_s6 + $0x10] sm:$0xff] (%p2180_p10)   ;;  %v1384_v19 = vld [vmem:[%s2293_s6 + $0x18] sm:$0xff] (%p2180_p10)  }
 0x21b   : > { %v779_v27 = vrot.slane %v771_v37, %v2246_v35  ;;  %v786_v45 = vrot.slane %v772_v38, %v2246_v35  ;;  %v795_v48 = vrot.slane %v787_v39, %v2246_v35  ;;  %v802_v49 = vrot.slane %v788_v40, %v2246_v35  ;;  %1377 = vst [vmem:[%s1355_s9 + $0x10] sm:$0xff] (%p2180_p10), %v1376_v34  }
 0x21c   : > { %v1160_v50 = vcombine.low %v711_v41, %v718_v42  ;;  %v1772_v51 = vcombine.high %v711_v41, %v718_v42  ;;  %v1176_v52 = vcombine.low %v727_v43, %v734_v44  ;;  %v1773_v53 = vcombine.high %v727_v43, %v734_v44  ;;  %1381 = vst [vmem:[%s1355_s9 + $0x20] sm:$0xff] (%p2180_p10), %v1380_v36  }
 0x21d   : > { %v1228_v54 = vcombine.low %v779_v27, %v786_v45  ;;  %v1774_v55 = vcombine.high %v779_v27, %v786_v45  ;;  %v1244_v56 = vcombine.low %v795_v48, %v802_v49  ;;  %v1775_v57 = vcombine.high %v795_v48, %v802_v49  ;;  %1385 = vst [vmem:[%s1355_s9 + $0x30] sm:$0xff] (%p2180_p10), %v1384_v19  }
 0x21e   : > { %v1167_v58 = vrot.slane %v1160_v50, %v2236_v24  ;;  %v1175_v59 = vrot.slane %v1772_v51, %v2236_v24  ;;  %v1183_v60 = vrot.slane %v1176_v52, %v2236_v24  ;;  %v1191_v61 = vrot.slane %v1773_v53, %v2236_v24 }
 0x21f   : > { %v1235_v62 = vrot.slane %v1228_v54, %v2236_v24  ;;  %v1243_v63 = vrot.slane %v1774_v55, %v2236_v24  ;;  %v1251_v0 = vrot.slane %v1244_v56, %v2236_v24  ;;  %v1259_v1 = vrot.slane %v1775_v57, %v2236_v24 }
 0x220   : > { %v1192_v2 = vcombine.low %v1167_v58, %v1175_v59  ;;  %v1193_v3 = vcombine.high %v1167_v58, %v1175_v59  ;;  %v1208_v4 = vcombine.low %v1183_v60, %v1191_v61  ;;  %v1209_v5 = vcombine.high %v1183_v60, %v1191_v61 }
 0x221   : > { %v1260_v6 = vcombine.low %v1235_v62, %v1243_v63  ;;  %v1261_v7 = vcombine.high %v1235_v62, %v1243_v63  ;;  %v1276_v8 = vcombine.low %v1251_v0, %v1259_v1  ;;  %v1277_v9 = vcombine.high %v1251_v0, %v1259_v1 }
 0x222   : > { %v1200_v10 = vrot.slane %v1192_v2, %v2246_v35  ;;  %v1207_v11 = vrot.slane %v1193_v3, %v2246_v35  ;;  %v1216_v12 = vrot.slane %v1208_v4, %v2246_v35  ;;  %v1223_v13 = vrot.slane %v1209_v5, %v2246_v35 }
 0x223   : > { %v1268_v14 = vrot.slane %v1260_v6, %v2246_v35  ;;  %v1275_v24 = vrot.slane %v1261_v7, %v2246_v35  ;;  %v1284_v15 = vrot.slane %v1276_v8, %v2246_v35  ;;  %v1291_v16 = vrot.slane %v1277_v9, %v2246_v35  ;;  %v1372_v35 = vld [vmem:[%s2293_s6] sm:$0xff] (%p2180_p10)  }
 0x224   : > { %v1224_v17 = vcombine.low %v1200_v10, %v1216_v12  ;;  %v1225_v18 = vcombine.high %v1200_v10, %v1216_v12  ;;  %v1226_v20 = vcombine.low %v1207_v11, %v1223_v13  ;;  %v1227_v46 = vcombine.high %v1207_v11, %v1223_v13  ;;  %1373 = vst [vmem:[%s1355_s9] sm:$0xff] (%p2180_p10), %v1372_v35  }
 0x225   : > { %v1292_v21 = vcombine.low %v1268_v14, %v1284_v15  ;;  %v1293_v22 = vcombine.high %v1268_v14, %v1284_v15  ;;  %v1294_v25 = vcombine.low %v1275_v24, %v1291_v16  ;;  %v1295_v26 = vcombine.high %v1275_v24, %v1291_v16 }
 0x226   : > { %v1814_v47 = vpack.c.bf16 %v1224_v17, %v1224_v17  ;;  %v1816_v29 = vpack.c.bf16 %v1225_v18, %v1225_v18  ;;  %v1818_v28 = vpack.c.bf16 %v1226_v20, %v1226_v20  ;;  %v1820_v30 = vpack.c.bf16 %v1227_v46, %v1227_v46 }
 0x227   : > { %v1815_v31 = vpack.c.bf16 %v1292_v21, %v1292_v21  ;;  %v1817_v32 = vpack.c.bf16 %v1293_v22, %v1293_v22  ;;  %v1819_v23 = vpack.c.bf16 %v1294_v25, %v1294_v25  ;;  %v1821_v33 = vpack.c.bf16 %v1295_v26, %v1295_v26  ;;  %1350 = sbr.rel (!%p2180_p10) target bundleno = 556 (0x22c), region = 40 }
 0x228   : > { %1328 = vst.msk [vmem:[%s2411_s25] sm:$0xf] %vm975_vm2, %v1814_v47  ;;  %1330 = vst.msk [vmem:[%s2411_s25 + $0x8] sm:$0xf] %vm975_vm2, %v1816_v29 }
 0x229   : > { %1332 = vst.msk [vmem:[%s2411_s25 + $0x10] sm:$0xf] %vm975_vm2, %v1818_v28  ;;  %1334 = vst.msk [vmem:[%s2411_s25 + $0x18] sm:$0xf] %vm975_vm2, %v1820_v30 }
 0x22a   : > { %1329 = vst.msk [vmem:[%s2411_s25 + $0x4] sm:$0xf] %vm975_vm2, %v1815_v31  ;;  %1331 = vst.msk [vmem:[%s2411_s25 + $0xc] sm:$0xf] %vm975_vm2, %v1817_v32 }
 0x22b   : > { %1333 = vst.msk [vmem:[%s2411_s25 + $0x14] sm:$0xf] %vm975_vm2, %v1819_v23  ;;  %1335 = vst.msk [vmem:[%s2411_s25 + $0x1c] sm:$0xf] %vm975_vm2, %v1821_v33 }
 0x22c PF: > { %1427 = sbr.rel (!%p2180_p10) target bundleno = 566 (0x236), region = 81  ;;  %s1790_s13 = sshll.u32 (%p2180_p10), %s2038_s18, 1  ;;  %v1449_v37 = vld [vmem:[%s2352_s7] sm:$0xff] (%p2180_p10)   ;;  %v1453_v38 = vld [vmem:[%s2352_s7 + $0x8] sm:$0xff] (%p2180_p10)   ;;  %v1457_v39 = vld [vmem:[%s2352_s7 + $0x10] sm:$0xff] (%p2180_p10)  }
 0x22d   : > { %s1791_s15 = sshll.u32 (%p2180_p10), %s2042_s19, 4  ;;  %v1461_v40 = vld [vmem:[%s2352_s7 + $0x18] sm:$0xff] (%p2180_p10)   ;;  %s2508_s26 = sld [smem:[#allocation14_spill]] (%p2180_p10) }
 0x22e   : > { %s1430_s30 = sadd.s32 (%p2180_p10), %s1791_s15, %s1790_s13 }
 0x22f   : > { %s1792_s2 = sshll.u32 (%p2180_p10), %s1430_s30, 2 }
 0x233   : > { %s1432_s27 = scalar_lea.vmem %s2508_s26, %s1792_s2 }
 0x234   : > { %1450 = vst [vmem:[%s1432_s27] sm:$0xff] %v1449_v37   ;;  %1454 = vst [vmem:[%s1432_s27 + $0x10] sm:$0xff] %v1453_v38  }
 0x235   : > { %1458 = vst [vmem:[%s1432_s27 + $0x20] sm:$0xff] %v1457_v39   ;;  %1462 = vst [vmem:[%s1432_s27 + $0x30] sm:$0xff] %v1461_v40  }
 0x236 PF: > { %1504 = sbr.rel (!%p2180_p10) target bundleno = 576 (0x240), region = 122  ;;  %s1793_s5 = sshll.u32 (%p2180_p10), %s2038_s18, 1  ;;  %v1526_v41 = vld [vmem:[%s2411_s25] sm:$0xff] (%p2180_p10)   ;;  %v1530_v42 = vld [vmem:[%s2411_s25 + $0x8] sm:$0xff] (%p2180_p10)  }
 0x237   : > { %s1794_s6 = sshll.u32 (%p2180_p10), %s2042_s19, 4  ;;  %v1534_v43 = vld [vmem:[%s2411_s25 + $0x10] sm:$0xff] (%p2180_p10)   ;;  %v1538_v44 = vld [vmem:[%s2411_s25 + $0x18] sm:$0xff] (%p2180_p10)   ;;  %s2509_s28 = sld [smem:[#allocation15_spill]] (%p2180_p10) }
 0x238   : > { %s1507_s7 = sadd.s32 (%p2180_p10), %s1794_s6, %s1793_s5 }
 0x239   : > { %s1795_s12 = sshll.u32 (%p2180_p10), %s1507_s7, 2 }
 0x23d   : > { %s1509_s29 = scalar_lea.vmem %s2509_s28, %s1795_s12 }
 0x23e   : > { %1527 = vst [vmem:[%s1509_s29] sm:$0xff] %v1526_v41   ;;  %1531 = vst [vmem:[%s1509_s29 + $0x10] sm:$0xff] %v1530_v42  }
 0x23f   : > { %1535 = vst [vmem:[%s1509_s29 + $0x20] sm:$0xff] %v1534_v43   ;;  %1539 = vst [vmem:[%s1509_s29 + $0x30] sm:$0xff] %v1538_v44  }
 0x240 PF: > { %s19_s22 = sadd.s32 1, %s2054_s22   ;;  %s2510_s14 = sld [smem:[#allocation11_spill]] }
 0x241   : > { %p16_p1 = scmp.ge.s32.totalorder %s19_s22, 6   ;;  %s2511_s15 = smov %s2030_s16 }
 0x242   : > { %s2512_s16 = smov %s2034_s17  ;;  %s2513_s17 = smov %s2193_s8 }
 0x243   : > { %s2514_s18 = smov %s2046_s20  ;;  %s2515_s19 = smov %s2050_s21 }
 0x244   : > { %s2517_s21 = smov %s2523_s10  ;;  %18 = sbr.rel (!%p16_p1) target bundleno = 11 (0xb), region = 219 }
 0x246   : > { %s2516_s20 = smov %s2510_s14 }
 0x249   :  { %1605 = vsyncpa [#allocation3], 1 }
 0x24a   :  { %1607 = vsyncpa [#allocation3 + $0x1], 1 }
 0x24b   :  { %1608 = vsyncpa [#allocation5], 1 }

</bundles_post_ra>
